<compile_context>
chip_gen: v7x
topology: tpu7x:2x2x1
jax: 0.10.0
libtpu: 0.0.40
codegen_flags: <defaults>
</compile_context>

<pallas_src>
import jax
import jax.numpy as jnp
from jax.experimental import pallas as pl
from jax.experimental.pallas import tpu as pltpu


def _linear_kernel(x_ref, wt_ref, b_ref, o_ref):
    # x_ref : (B, IN)   wt_ref : (IN, OUT)   b_ref : (1, OUT)   o_ref : (B, OUT)
    x = x_ref[...].astype(jnp.float32)                 # (B, IN)
    b = b_ref[...].astype(jnp.float32)                 # (1, OUT)
    B = x.shape[0]
    IN = x.shape[1]
    OUT = b.shape[1]

    # Start the accumulator from the (broadcast) bias, f32 accumulation.
    acc = jnp.broadcast_to(b, (B, OUT)).astype(jnp.float32)

    # Unrolled VPU FMA: acc += x[:, k:k+1] * W_t[k, :]  for k in 0..IN-1.
    # Static Python loop -> fully unrolled at trace time (IN == 4).
    for k in range(IN):
        xk = x[:, k:k + 1]                              # (B, 1)
        wk = wt_ref[k:k + 1, :].astype(jnp.float32)     # (1, OUT)
        acc = acc + xk * wk                             # broadcasts to (B, OUT)

    o_ref[...] = acc.astype(o_ref.dtype)


def softmax_classifier_forward(x, weight, bias):
    """Forward of SoftmaxClassifierModel: y = x @ weight.T + bias (no softmax)."""
    B, IN = x.shape
    OUT = weight.shape[0]

    # Free layout plumbing in the wrapper (outside the kernel):
    w_t = weight.T                      # (IN, OUT) — avoids in-kernel transpose
    bias2d = bias.reshape(1, OUT)       # keep kernel refs >= 2-D

    cost = pl.CostEstimate(
        flops=2 * B * IN * OUT,
        bytes_accessed=4 * (B * IN + IN * OUT + OUT + B * OUT),
        transcendentals=0,
    )

    return pl.pallas_call(
        _linear_kernel,
        out_shape=jax.ShapeDtypeStruct((B, OUT), x.dtype),
        in_specs=[
            pl.BlockSpec(memory_space=pltpu.MemorySpace.VMEM),  # x (whole array)
            pl.BlockSpec(memory_space=pltpu.MemorySpace.VMEM),  # W^T
            pl.BlockSpec(memory_space=pltpu.MemorySpace.VMEM),  # bias (1, OUT)
        ],
        out_specs=pl.BlockSpec(memory_space=pltpu.MemorySpace.VMEM),
        cost_estimate=cost,
    )(x, w_t, bias2d)


if __name__ == "__main__":
    key = jax.random.PRNGKey(0)
    kx, kw, kb = jax.random.split(key, 3)

    # lab-06_1 softmax classification: 8 samples, 4 features, 3 classes.
    B, IN, OUT = 8, 4, 3
    x = jax.random.normal(kx, (B, IN), dtype=jnp.float32)

    # Deterministic parameter init (mimic nn.Linear's uniform(-1/sqrt(IN), 1/sqrt(IN))).
    bound = 1.0 / jnp.sqrt(jnp.float32(IN))
    weight = jax.random.uniform(kw, (OUT, IN), dtype=jnp.float32,
                                minval=-bound, maxval=bound)
    bias = jax.random.uniform(kb, (OUT,), dtype=jnp.float32,
                              minval=-bound, maxval=bound)

    y = softmax_classifier_forward(x, weight, bias)
    jax.block_until_ready(y)

    # Correctness check against plain-JAX reference of nn.Linear forward.
    y_ref = x @ weight.T + bias
    assert y.shape == (B, OUT)
    assert jnp.allclose(y, y_ref, atol=1e-5, rtol=1e-5)

    print("KERNEL_OK")
</pallas_src>

<mosaic_0001>
module attributes {stable_mosaic.version = 11 : i64} {
  func.func @_linear_kernel(%arg0: memref<8x4xf32, #tpu.memory_space<vmem>>, %arg1: memref<4x3xf32, #tpu.memory_space<vmem>>, %arg2: memref<1x3xf32, #tpu.memory_space<vmem>>, %arg3: memref<8x3xf32, #tpu.memory_space<vmem>>) attributes {dimension_semantics = [], scalar_prefetch = 0 : i64, scratch_operands = 0 : i64, tpu.core_type = #tpu.core_type<tc>} {
    %c0 = arith.constant 0 : index
    %c0_0 = arith.constant 0 : index
    %0 = vector.load %arg0[%c0, %c0_0] : memref<8x4xf32, #tpu.memory_space<vmem>>, vector<8x4xf32>
    %c0_1 = arith.constant 0 : index
    %c0_2 = arith.constant 0 : index
    %1 = vector.load %arg2[%c0_1, %c0_2] : memref<1x3xf32, #tpu.memory_space<vmem>>, vector<1x3xf32>
    %2 = vector.shape_cast %1 : vector<1x3xf32> to vector<1x3xf32>
    %3 = vector.broadcast %2 : vector<1x3xf32> to vector<8x3xf32>
    %4 = vector.extract_strided_slice %0 {offsets = [0, 0], sizes = [8, 1], strides = [1, 1]} : vector<8x4xf32> to vector<8x1xf32>
    %c0_3 = arith.constant 0 : index
    %c0_4 = arith.constant 0 : index
    %5 = vector.load %arg1[%c0_3, %c0_4] : memref<4x3xf32, #tpu.memory_space<vmem>>, vector<1x3xf32>
    %6 = vector.broadcast %4 : vector<8x1xf32> to vector<8x3xf32>
    %7 = vector.broadcast %5 : vector<1x3xf32> to vector<8x3xf32>
    %8 = arith.mulf %6, %7 : vector<8x3xf32>
    %9 = arith.addf %3, %8 : vector<8x3xf32>
    %10 = vector.extract_strided_slice %0 {offsets = [0, 1], sizes = [8, 1], strides = [1, 1]} : vector<8x4xf32> to vector<8x1xf32>
    %c1 = arith.constant 1 : index
    %c0_5 = arith.constant 0 : index
    %11 = vector.load %arg1[%c1, %c0_5] : memref<4x3xf32, #tpu.memory_space<vmem>>, vector<1x3xf32>
    %12 = vector.broadcast %10 : vector<8x1xf32> to vector<8x3xf32>
    %13 = vector.broadcast %11 : vector<1x3xf32> to vector<8x3xf32>
    %14 = arith.mulf %12, %13 : vector<8x3xf32>
    %15 = arith.addf %9, %14 : vector<8x3xf32>
    %16 = vector.extract_strided_slice %0 {offsets = [0, 2], sizes = [8, 1], strides = [1, 1]} : vector<8x4xf32> to vector<8x1xf32>
    %c2 = arith.constant 2 : index
    %c0_6 = arith.constant 0 : index
    %17 = vector.load %arg1[%c2, %c0_6] : memref<4x3xf32, #tpu.memory_space<vmem>>, vector<1x3xf32>
    %18 = vector.broadcast %16 : vector<8x1xf32> to vector<8x3xf32>
    %19 = vector.broadcast %17 : vector<1x3xf32> to vector<8x3xf32>
    %20 = arith.mulf %18, %19 : vector<8x3xf32>
    %21 = arith.addf %15, %20 : vector<8x3xf32>
    %22 = vector.extract_strided_slice %0 {offsets = [0, 3], sizes = [8, 1], strides = [1, 1]} : vector<8x4xf32> to vector<8x1xf32>
    %c3 = arith.constant 3 : index
    %c0_7 = arith.constant 0 : index
    %23 = vector.load %arg1[%c3, %c0_7] : memref<4x3xf32, #tpu.memory_space<vmem>>, vector<1x3xf32>
    %24 = vector.broadcast %22 : vector<8x1xf32> to vector<8x3xf32>
    %25 = vector.broadcast %23 : vector<1x3xf32> to vector<8x3xf32>
    %26 = arith.mulf %24, %25 : vector<8x3xf32>
    %27 = arith.addf %21, %26 : vector<8x3xf32>
    %c0_8 = arith.constant 0 : index
    %c0_9 = arith.constant 0 : index
    %28 = vector.load %arg3[%c0_8, %c0_9] : memref<8x3xf32, #tpu.memory_space<vmem>>, vector<8x3xf32>
    tpu.vector_store %arg3[%c0_8, %c0_9], %27 {strides = array<i32>} : memref<8x3xf32, #tpu.memory_space<vmem>>, vector<8x3xf32>,
    return
  }
}

</mosaic_0001>

<bundles_post_ra>
// kernel: tpu_custom_call.1
= control target key start
LH: loop header
LB: loop body
LE: loop exit
PB: predicated region body
PF: predicated region fallthrough
CT: control target
= control target key end

     0   :  { %v87_v0 = vmov 0   ;;  %v88_v2 = vmov 2   ;;  %v89_v3 = vmov 1   ;;  %v90_v4 = vmov 3   ;;  %s132_s0 = inlined_call_operand.vmem [shape: f32[8,4], index: 0, kind: input, shape index: {}]   ;;  %s133_s1 = inlined_call_operand.vmem [shape: f32[4,3], index: 1, kind: input, shape index: {}]   ;;  %s134_s2 = inlined_call_operand.vmem [shape: f32[1,3], index: 2, kind: input, shape index: {}]   ;;  %s135_s3 = inlined_call_operand.vmem [shape: f32[8,3], index: 3, kind: output, shape index: {}]  }
   0x1   :  { %82 = vset.pattern.permute.xlu0 %v87_v0  ;;  %v14_v1 = vld [vmem:[%s132_s0] sm:$0xff]  ;;  %84 = vset.pattern.permute.xlu1 %v88_v2  ;;  %vm67_vm0 = vcmask 23552  }
   0x2   :  { %25 = vperm.xlu0 %82, %v14_v1   ;;  %47 = vperm.xlu1 %84, %v14_v1   ;;  %v74_v5 = vld [vmem:[%s133_s1] ss:$0 sm:$0xff]  ;;  %v75_v10 = vld [vmem:[%s133_s1 + $0x1] ss:$0 sm:$0xff]  ;;  %v76_v11 = vld [vmem:[%s133_s1 + $0x2] ss:$0 sm:$0xff] }
   0x3   :  { %v73_v9 = vld [vmem:[%s134_s2] ss:$0 sm:$0xff]  ;;  %v77_v13 = vld [vmem:[%s133_s1 + $0x3] ss:$0 sm:$0xff] }
   0x6   :  { %83 = vset.pattern.permute.xlu0 %v89_v3  ;;  %85 = vset.pattern.permute.xlu1 %v90_v4 }
   0x7   :  { %36 = vperm.xlu0 %83, %v14_v1   ;;  %58 = vperm.xlu1 %85, %v14_v1  }
   0xb   :  { %86 = vset.pattern.permute.xlu0 %v90_v4 }
  0x81   :  { %v26_v6 = vpop.permute.xlu0 %25  ;;  %v48_v7 = vpop.permute.xlu1 %47 }
  0x82   :  { %v32_v8 = vmul.f32 %v74_v5, %v26_v6  ;;  %v54_v17 = vmul.f32 %v76_v11, %v48_v7 }
  0x84   :  { %v33_v15 = vadd.f32 %v73_v9, %v32_v8 }
  0x86   :  { %v37_v12 = vpop.permute.xlu0 %36  ;;  %v59_v14 = vpop.permute.xlu1 %58 }
  0x87   :  { %v43_v16 = vmul.f32 %v75_v10, %v37_v12  ;;  %v65_v19 = vmul.f32 %v77_v13, %v59_v14 }
  0x89   :  { %v44_v18 = vadd.f32 %v43_v16, %v33_v15 }
  0x8b   :  { %v55_v20 = vadd.f32 %v54_v17, %v44_v18 }
  0x8d   :  { %v66_v21 = vadd.f32 %v65_v19, %v55_v20 }
  0x8f   :  { %68 = vst.msk [vmem:[%s135_s3] sm:$0xff] %vm67_vm0, %v66_v21 }

</bundles_post_ra>
